<compile_context>
chip_gen: v7x
topology: tpu7x:2x2x1
jax: 0.10.0
libtpu: 0.0.40
codegen_flags: <defaults>
</compile_context>

<pallas_src>
import jax
import jax.numpy as jnp
from jax import lax
from jax.experimental import pallas as pl
from jax.experimental.pallas import tpu as pltpu

GAMMA = 2.0
OPL_RATIO = 0.1


def _opl_kernel(features_ref, preds_ref, labels_ref, out_ref):
    f = features_ref[...].astype(jnp.float32)          # (B, D)
    preds = preds_ref[...].astype(jnp.float32)         # (B, C)
    labels = labels_ref[...].astype(jnp.float32)       # (B, C) one-hot
    B = f.shape[0]

    # ---- base loss: softmax cross-entropy with one-hot targets (mean over batch)
    mx = jnp.max(preds, axis=1, keepdims=True)
    z = preds - mx
    lse = jnp.log(jnp.sum(jnp.exp(z), axis=1, keepdims=True))
    log_sm = z - lse
    base_loss = -jnp.sum(labels * log_sm) * jnp.float32(1.0 / B)   # scalar

    # ---- F.normalize(features, p=2, dim=1): rsqrt of clamped sum of squares
    # (torch eps=1e-12 on the norm -> 1e-24 on the squared norm)
    sumsq = jnp.sum(f * f, axis=1, keepdims=True)
    fn = f * lax.rsqrt(jnp.maximum(sumsq, jnp.float32(1e-24)))

    # ---- bf16 MXU operand feeds, f32 accumulation (elementwise math stays f32)
    labels_b = labels.astype(jnp.bfloat16)
    fn_b = fn.astype(jnp.bfloat16)

    # same-class indicator on the MXU: labels @ labels^T (exact for one-hot,
    # 0/1 values are bf16-exact); transpose absorbed into the contraction.
    same = lax.dot_general(labels_b, labels_b,
                           dimension_numbers=(((1,), (1,)), ((), ())),
                           preferred_element_type=jnp.float32)      # (B, B)

    # pairwise cosine similarities
    dot = lax.dot_general(fn_b, fn_b,
                          dimension_numbers=(((1,), (1,)), ((), ())),
                          preferred_element_type=jnp.float32)       # (B, B)

    # ---- analytic counts from label column sums: sum(same) = sum_c (col_c)^2
    col = jnp.sum(labels, axis=0, keepdims=True)                    # (1, C)
    s_same = jnp.sum(col * col)                                     # scalar
    pos_cnt = s_same - jnp.float32(B)            # == sum(mask_pos) for one-hot
    neg_cnt = jnp.float32(B * B) - s_same        # == sum(mask_neg)

    # ---- positive pairs: off-diagonal same-class entries.
    # sum(mask_pos * dot) == sum(same * dot) - trace(dot); trace is recomputed
    # elementwise from the identical bf16 operand so it tracks the MXU diagonal
    # (zero feature rows -> diag 0 on both sides). Guard the no-positive-pair
    # case so the result is exactly 0 (matching mask_pos == 0 in the module).
    fn_bw = fn_b.astype(jnp.float32)
    trace_dot = jnp.sum(fn_bw * fn_bw)                              # == sum_i dot[i,i]
    pos_w_raw = jnp.sum(same * dot) - trace_dot
    pos_w = jnp.where(pos_cnt > jnp.float32(0.5), pos_w_raw, jnp.float32(0.0))

    # ---- negative pairs: mask_neg is 0/1 so |mask_neg*dot| == mask_neg*|dot|
    neg_w = jnp.sum((jnp.float32(1.0) - same) * jnp.abs(dot))

    # exact scalar divides (EUP approx reciprocal buys nothing at scalar scale)
    pos_pairs_mean = pos_w / (pos_cnt + jnp.float32(1e-6))
    neg_pairs_mean = neg_w / (neg_cnt + jnp.float32(1e-6))

    opl = jnp.float32(1.0) - pos_pairs_mean + jnp.float32(GAMMA) * neg_pairs_mean
    out_ref[0, 0] = base_loss + jnp.float32(OPL_RATIO) * opl


def orthogonal_projection_loss(features, preds, labels):
    """features: (B, D) float, preds: (B, C) logits, labels: (B, C) one-hot."""
    out = pl.pallas_call(
        _opl_kernel,
        out_shape=jax.ShapeDtypeStruct((1, 1), jnp.float32),
        in_specs=[
            pl.BlockSpec(memory_space=pltpu.MemorySpace.VMEM),
            pl.BlockSpec(memory_space=pltpu.MemorySpace.VMEM),
            pl.BlockSpec(memory_space=pltpu.MemorySpace.VMEM),
        ],
        out_specs=pl.BlockSpec(memory_space=pltpu.MemorySpace.SMEM),
    )(features, preds, labels)
    return out[0, 0]


def _reference(features, preds, labels):
    # pure-JAX reference for sanity checking
    f = features.astype(jnp.float32)
    p = preds.astype(jnp.float32)
    y = labels.astype(jnp.float32)
    B = f.shape[0]
    log_sm = jax.nn.log_softmax(p, axis=1)
    base = -jnp.sum(y * log_sm) / B
    idx = jnp.argmax(y, axis=1)
    fn = f / jnp.maximum(jnp.linalg.norm(f, axis=1, keepdims=True), 1e-12)
    dot = fn @ fn.T
    same = (idx[:, None] == idx[None, :]).astype(jnp.float32)
    eye = jnp.eye(B, dtype=jnp.float32)
    mask_pos = same * (1.0 - eye)
    mask_neg = 1.0 - same
    pos = jnp.sum(mask_pos * dot) / (jnp.sum(mask_pos) + 1e-6)
    neg = jnp.sum(jnp.abs(mask_neg * dot)) / (jnp.sum(mask_neg) + 1e-6)
    return base + OPL_RATIO * (1.0 - pos + GAMMA * neg)


if __name__ == "__main__":
    key = jax.random.PRNGKey(0)
    k1, k2, k3 = jax.random.split(key, 3)

    B, D, C = 8, 32, 16
    features = jax.random.normal(k1, (B, D), dtype=jnp.float32)
    preds = jax.random.normal(k2, (B, C), dtype=jnp.float32)
    label_idx = jax.random.randint(k3, (B,), 0, C)
    labels = jax.nn.one_hot(label_idx, C, dtype=jnp.float32)

    out = orthogonal_projection_loss(features, preds, labels)
    out = jax.block_until_ready(out)

    ref = _reference(features, preds, labels)
    # tolerance covers only the bf16 MXU operand quantization (~few e-4 on the
    # final loss); scalar divides are exact now.
    assert jnp.allclose(out, ref, rtol=1e-3, atol=1e-3), (out, ref)
    print("KERNEL_OK")
</pallas_src>

<mosaic_0001>
module attributes {stable_mosaic.version = 11 : i64} {
  func.func @_opl_kernel(%arg0: memref<8x32xf32, #tpu.memory_space<vmem>>, %arg1: memref<8x16xf32, #tpu.memory_space<vmem>>, %arg2: memref<8x16xf32, #tpu.memory_space<vmem>>, %arg3: memref<1x1xf32, #tpu.memory_space<smem>>) attributes {dimension_semantics = [], scalar_prefetch = 0 : i64, scratch_operands = 0 : i64, tpu.core_type = #tpu.core_type<tc>} {
    %c0 = arith.constant 0 : index
    %c0_0 = arith.constant 0 : index
    %0 = vector.load %arg0[%c0, %c0_0] : memref<8x32xf32, #tpu.memory_space<vmem>>, vector<8x32xf32>
    %c0_1 = arith.constant 0 : index
    %c0_2 = arith.constant 0 : index
    %1 = vector.load %arg1[%c0_1, %c0_2] : memref<8x16xf32, #tpu.memory_space<vmem>>, vector<8x16xf32>
    %c0_3 = arith.constant 0 : index
    %c0_4 = arith.constant 0 : index
    %2 = vector.load %arg2[%c0_3, %c0_4] : memref<8x16xf32, #tpu.memory_space<vmem>>, vector<8x16xf32>
    %cst = arith.constant dense<0xFF800000> : vector<8xf32>
    %3 = vector.multi_reduction <maximumf>, %1, %cst [1] : vector<8x16xf32> to vector<8xf32>
    %4 = vector.shape_cast %3 : vector<8xf32> to vector<8x1xf32>
    %5 = vector.broadcast %4 : vector<8x1xf32> to vector<8x16xf32>
    %6 = arith.subf %1, %5 : vector<8x16xf32>
    %7 = math.exp %6 : vector<8x16xf32>
    %cst_5 = arith.constant dense<0.000000e+00> : vector<8xf32>
    %8 = vector.multi_reduction <add>, %7, %cst_5 [1] : vector<8x16xf32> to vector<8xf32>
    %9 = vector.shape_cast %8 : vector<8xf32> to vector<8x1xf32>
    %10 = math.log %9 : vector<8x1xf32>
    %11 = vector.broadcast %10 : vector<8x1xf32> to vector<8x16xf32>
    %12 = arith.subf %6, %11 : vector<8x16xf32>
    %13 = arith.mulf %2, %12 : vector<8x16xf32>
    %14 = vector.shape_cast %13 : vector<8x16xf32> to vector<1x8x16xf32>
    %cst_6 = arith.constant dense<0.000000e+00> : vector<1xf32>
    %15 = vector.multi_reduction <add>, %14, %cst_6 [1, 2] : vector<1x8x16xf32> to vector<1xf32>
    %16 = vector.shape_cast %15 : vector<1xf32> to vector<1x1x1xf32>
    %17 = vector.extract %16[0, 0, 0] : f32 from vector<1x1x1xf32>
    %cst_7 = arith.constant 0.000000e+00 : f32
    %18 = arith.subf %cst_7, %17 : f32
    %cst_8 = arith.constant 1.250000e-01 : f32
    %19 = arith.mulf %18, %cst_8 : f32
    %20 = arith.mulf %0, %0 : vector<8x32xf32>
    %cst_9 = arith.constant dense<0.000000e+00> : vector<8xf32>
    %21 = vector.multi_reduction <add>, %20, %cst_9 [1] : vector<8x32xf32> to vector<8xf32>
    %22 = vector.shape_cast %21 : vector<8xf32> to vector<8x1xf32>
    %cst_10 = arith.constant 1.000000e-24 : f32
    %23 = vector.broadcast %cst_10 : f32 to vector<8x1xf32>
    %24 = arith.maximumf %22, %23 : vector<8x1xf32>
    %25 = math.rsqrt %24 : vector<8x1xf32>
    %26 = vector.broadcast %25 : vector<8x1xf32> to vector<8x32xf32>
    %27 = arith.mulf %0, %26 : vector<8x32xf32>
    %28 = arith.truncf %2 : vector<8x16xf32> to vector<8x16xbf16>
    %29 = arith.truncf %27 : vector<8x32xf32> to vector<8x32xbf16>
    %cst_11 = arith.constant dense<0.000000e+00> : vector<8x8xf32>
    %30 = tpu.matmul %28, %28, %cst_11 {dimension_numbers = #tpu.dot_dimension_numbers<[1], [1], [0], [0], [0, 0, 1, 0], [], []>} : vector<8x16xbf16>, vector<8x16xbf16>, vector<8x8xf32> -> vector<8x8xf32>
    %cst_12 = arith.constant dense<0.000000e+00> : vector<8x8xf32>
    %31 = tpu.matmul %29, %29, %cst_12 {dimension_numbers = #tpu.dot_dimension_numbers<[1], [1], [0], [0], [0, 0, 1, 0], [], []>} : vector<8x32xbf16>, vector<8x32xbf16>, vector<8x8xf32> -> vector<8x8xf32>
    %cst_13 = arith.constant dense<0.000000e+00> : vector<16xf32>
    %32 = vector.multi_reduction <add>, %2, %cst_13 [0] : vector<8x16xf32> to vector<16xf32>
    %33 = vector.shape_cast %32 : vector<16xf32> to vector<1x16xf32>
    %34 = arith.mulf %33, %33 : vector<1x16xf32>
    %35 = vector.shape_cast %34 : vector<1x16xf32> to vector<1x1x16xf32>
    %cst_14 = arith.constant dense<0.000000e+00> : vector<1xf32>
    %36 = vector.multi_reduction <add>, %35, %cst_14 [1, 2] : vector<1x1x16xf32> to vector<1xf32>
    %37 = vector.shape_cast %36 : vector<1xf32> to vector<1x1x1xf32>
    %38 = vector.extract %37[0, 0, 0] : f32 from vector<1x1x1xf32>
    %cst_15 = arith.constant 8.000000e+00 : f32
    %39 = arith.subf %38, %cst_15 : f32
    %cst_16 = arith.constant 6.400000e+01 : f32
    %40 = arith.subf %cst_16, %38 : f32
    %41 = arith.extf %29 : vector<8x32xbf16> to vector<8x32xf32>
    %42 = arith.mulf %41, %41 : vector<8x32xf32>
    %43 = vector.shape_cast %42 : vector<8x32xf32> to vector<1x8x32xf32>
    %cst_17 = arith.constant dense<0.000000e+00> : vector<1xf32>
    %44 = vector.multi_reduction <add>, %43, %cst_17 [1, 2] : vector<1x8x32xf32> to vector<1xf32>
    %45 = vector.shape_cast %44 : vector<1xf32> to vector<1x1x1xf32>
    %46 = vector.extract %45[0, 0, 0] : f32 from vector<1x1x1xf32>
    %47 = arith.mulf %30, %31 : vector<8x8xf32>
    %48 = vector.shape_cast %47 : vector<8x8xf32> to vector<1x8x8xf32>
    %cst_18 = arith.constant dense<0.000000e+00> : vector<1xf32>
    %49 = vector.multi_reduction <add>, %48, %cst_18 [1, 2] : vector<1x8x8xf32> to vector<1xf32>
    %50 = vector.shape_cast %49 : vector<1xf32> to vector<1x1x1xf32>
    %51 = vector.extract %50[0, 0, 0] : f32 from vector<1x1x1xf32>
    %52 = arith.subf %51, %46 : f32
    %cst_19 = arith.constant 5.000000e-01 : f32
    %53 = arith.cmpf ogt, %39, %cst_19 : f32
    %cst_20 = arith.constant 0.000000e+00 : f32
    %54 = arith.select %53, %52, %cst_20 : f32
    %cst_21 = arith.constant 1.000000e+00 : f32
    %55 = vector.broadcast %cst_21 : f32 to vector<8x8xf32>
    %56 = arith.subf %55, %30 : vector<8x8xf32>
    %57 = math.absf %31 : vector<8x8xf32>
    %58 = arith.mulf %56, %57 : vector<8x8xf32>
    %59 = vector.shape_cast %58 : vector<8x8xf32> to vector<1x8x8xf32>
    %cst_22 = arith.constant dense<0.000000e+00> : vector<1xf32>
    %60 = vector.multi_reduction <add>, %59, %cst_22 [1, 2] : vector<1x8x8xf32> to vector<1xf32>
    %61 = vector.shape_cast %60 : vector<1xf32> to vector<1x1x1xf32>
    %62 = vector.extract %61[0, 0, 0] : f32 from vector<1x1x1xf32>
    %cst_23 = arith.constant 9.99999997E-7 : f32
    %63 = arith.addf %39, %cst_23 : f32
    %64 = arith.divf %54, %63 : f32
    %cst_24 = arith.constant 9.99999997E-7 : f32
    %65 = arith.addf %40, %cst_24 : f32
    %66 = arith.divf %62, %65 : f32
    %cst_25 = arith.constant 1.000000e+00 : f32
    %67 = arith.subf %cst_25, %64 : f32
    %cst_26 = arith.constant 2.000000e+00 : f32
    %68 = arith.mulf %cst_26, %66 : f32
    %69 = arith.addf %67, %68 : f32
    %cst_27 = arith.constant 1.000000e-01 : f32
    %70 = arith.mulf %cst_27, %69 : f32
    %71 = arith.addf %19, %70 : f32
    %c0_28 = arith.constant 0 : index
    %c0_29 = arith.constant 0 : index
    %72 = memref.load %arg3[%c0_28, %c0_29] : memref<1x1xf32, #tpu.memory_space<smem>>
    memref.store %71, %arg3[%c0_28, %c0_29] : memref<1x1xf32, #tpu.memory_space<smem>>
    return
  }
}

</mosaic_0001>

<bundles_post_ra>
// kernel: tpu_custom_call.1
= control target key start
LH: loop header
LB: loop body
LE: loop exit
PB: predicated region body
PF: predicated region fallthrough
CT: control target
= control target key end

     0   :  { %8 = vsyncpa [#allocation3], 0  ;;  %s487_s0 = inlined_call_operand.hbm [shape: f32[8,32], index: 0, kind: input, shape index: {}]   ;;  %s488_s1 = inlined_call_operand.hbm [shape: f32[8,16], index: 1, kind: input, shape index: {}]   ;;  %s489_s2 = inlined_call_operand.hbm [shape: f32[8,16], index: 2, kind: input, shape index: {}]   ;;  %s490_s3 = inlined_call_operand.hbm [shape: f32[1,1], index: 3, kind: output, shape index: {}]  }
   0x1   :  { %9 = vsyncpa [#allocation6], 0 }
   0x2   :  { %10 = vsyncpa [#allocation4], 0  ;;  %s400_s12 = smov [#allocation5]   ;;  %s401_s14 = smov [#allocation2]  }
   0x3   :  { %s27_s13 = sshll.u32 %s400_s12, 4  ;;  %s17_s15 = sshll.u32 %s401_s14, 4  ;;  %s28_s13 = int_to_ptr.vmem [resolvable:$true] %s27_s13  ;;  %s18_s15 = int_to_ptr.vmem [resolvable:$true] %s17_s15 }
   0x4   :  { %s318_s18 = scalar_lea.hbm %s488_s1, 128 }
   0x5   :  { %p319_p0 = scmp.ne.s32.totalorder %s488_s1, %s318_s18  ;;  %p322_p1 = scmp.lt.u32.totalorder %s318_s18, %s488_s1 }
   0x7   :  { %p324_p2 = pnand %p322_p1, %p319_p0 }
   0x9   :  { %327 = shalt.err (!%p324_p2)
}
   0xa   :  { %s328_s23 = scalar_lea.vmem %s28_s13, 128  ;;  %p333_p4 = scmp.lt.s32.totalorder %s28_s13, %s28_s13 }
   0xb   :  { %p329_p3 = scmp.ne.s32.totalorder %s28_s13, %s328_s23  ;;  %p334_p5 = scmp.lt.s32.totalorder %s328_s23, %s328_s23 }
   0xd   :  { %p335_p6 = por %p334_p5, %p333_p4 }
   0xf   :  { %p336_p7 = pnand %p335_p6, %p329_p3 }
  0x11   :  { %339 = shalt.err (!%p336_p7)
}
  0x12   :  { %30 = dma.hbm_to_vmem [thread:$0]  %s488_s1, 128, %s28_s13, [#allocation6]  }
  0x13   :  { %s340_s28 = scalar_lea.hbm %s487_s0, 128 }
  0x14   :  { %p341_p8 = scmp.ne.s32.totalorder %s487_s0, %s340_s28  ;;  %p344_p9 = scmp.lt.u32.totalorder %s340_s28, %s487_s0 }
  0x16   :  { %p346_p10 = pnand %p344_p9, %p341_p8 }
  0x18   :  { %349 = shalt.err (!%p346_p10)
}
  0x19   :  { %s350_s6 = scalar_lea.vmem %s18_s15, 128  ;;  %p355_p12 = scmp.lt.s32.totalorder %s18_s15, %s18_s15 }
  0x1a   :  { %p351_p11 = scmp.ne.s32.totalorder %s18_s15, %s350_s6  ;;  %p356_p13 = scmp.lt.s32.totalorder %s350_s6, %s350_s6 }
  0x1c   :  { %p357_p0 = por %p356_p13, %p355_p12 }
  0x1e   :  { %p358_p1 = pnand %p357_p0, %p351_p11 }
  0x20   :  { %361 = shalt.err (!%p358_p1)
}
  0x21   :  { %20 = dma.hbm_to_vmem [thread:$0]  %s487_s0, 128, %s18_s15, [#allocation3]  }
  0x22   :  { %s402_s8 = smov [#allocation7]   ;;  %s362_s12 = scalar_lea.hbm %s489_s2, 128 }
  0x23   :  { %s37_s9 = sshll.u32 %s402_s8, 4  ;;  %p363_p2 = scmp.ne.s32.totalorder %s489_s2, %s362_s12  ;;  %s38_s9 = int_to_ptr.vmem [resolvable:$true] %s37_s9 }
  0x24   :  { %p366_p3 = scmp.lt.u32.totalorder %s362_s12, %s489_s2 }
  0x26   :  { %p368_p4 = pnand %p366_p3, %p363_p2 }
  0x28   :  { %371 = shalt.err (!%p368_p4)
}
  0x29   :  { %s372_s18 = scalar_lea.vmem %s38_s9, 128  ;;  %p377_p6 = scmp.lt.s32.totalorder %s38_s9, %s38_s9 }
  0x2a   :  { %p373_p5 = scmp.ne.s32.totalorder %s38_s9, %s372_s18  ;;  %p378_p7 = scmp.lt.s32.totalorder %s372_s18, %s372_s18 }
  0x2c   :  { %p379_p8 = por %p378_p7, %p377_p6 }
  0x2e   :  { %p380_p9 = pnand %p379_p8, %p373_p5 }
  0x30   :  { %383 = shalt.err (!%p380_p9)
}
  0x31   :  { %40 = dma.hbm_to_vmem [thread:$0]  %s489_s2, 128, %s38_s9, [#allocation6]  }
  0x32   :  { %394 = dma.done.wait [#allocation3], 128  }
  0x33   :  { %395 = vsyncadd [#allocation3], 4294967168 }
  0x34   :  { %396 = dma.done.wait [#allocation6], 256  }
  0x35   :  { %397 = vsyncadd [#allocation6], 4294967040  ;;  %v51_v0 = vld [vmem:[#allocation2] sm:$0xff]  ;;  %vm81_vm0 = vcmask 261120   ;;  %v52_v2 = vld [vmem:[#allocation5] sm:$0xff]  ;;  %vm54_vm1 = vcmask 130048  }
  0x36   :  { %v80_v1 = vmul.f32 %v51_v0, %v51_v0  ;;  %v55_v4 = vsel %vm54_vm1, %v52_v2, -inf  ;;  %v53_v5 = vld [vmem:[#allocation7] sm:$0xff]  ;;  %v403_v6 = vmov 0.0   ;;  %vm404_vm2 = vmmov 0   ;;  %s384_s13 = scalar_lea.hbm %s490_s3, 16 }
  0x37   :  { %276 = vmatprep.subr.bf16.mxu0 %v403_v6  ;;  %v88_v7 = vpack.c.bf16 %v53_v5, %v53_v5  ;;  %282 = vmatprep.subr.bf16.mxu1 %v403_v6  ;;  %v176_v20 = vsel %vm54_vm1, %v53_v5, 0.0  ;;  %vm184_vm3 = vcmask 122880   ;;  %vm210_vm4 = vcmask 64512   ;;  %p385_p11 = scmp.ne.s32.totalorder %s490_s3, %s384_s13  ;;  %p388_p12 = scmp.lt.u32.totalorder %s384_s13, %s490_s3 }
  0x38   :  { %v82_v3 = vsel %vm81_vm0, %v80_v1, 0.0  ;;  %278 = vmatprep.mubr.msk.bf16.mxu0 %vm404_vm2, %v403_v6  ;;  %284 = vmatprep.mubr.msk.bf16.mxu1 %vm404_vm2, %v403_v6  ;;  %v177_v21 = vrot.slane %v176_v20, 4 }
  0x39   :  { %83 = vadd.xlane.f32.xlu0 %v82_v3  ;;  %v91_v8 = vsel %vm54_vm1, %v88_v7, 0  ;;  %p390_p13 = pnand %p388_p12, %p385_p11 }
  0x3a   :  { %277 = vmatpush3.bf16.xpose.msra.mxu0 %v91_v8  ;;  %v178_v22 = vadd.f32 %v177_v21, %v176_v20 }
  0x3c   :  { %v179_v23 = vrot.slane %v178_v22, 2 }
  0x3d   :  { %56 = vmax.xlane.f32.xlu0 %v55_v4 }
  0x3e   :  { %v180_v24 = vadd.f32 %v179_v23, %v178_v22 }
  0x40   :  { %v181_v25 = vrot.slane %v180_v24, 1 }
  0x41   :  { %279 = vmatmul.mubr.msk.bf16.vlgmr.msra.gmra.mrb[0].mxu0 %vm54_vm1, %v88_v7 }
  0x42   :  { %v182_v26 = vadd.f32 %v181_v25, %v180_v24 }
  0x44   :  { %v183_v27 = vmul.f32 %v182_v26, %v182_v26 }
  0x46   :  { %v185_v28 = vsel %vm184_vm3, %v183_v27, 0.0 }
  0x47   :  { %186 = vadd.xlane.f32.xlu0 %v185_v28 }
  0xc6   :  { %v84_v9 = vpop.xlane.xlu0 %83 }
  0xc7   :  { %v85_v10 = vmax.f32 %v84_v9, 1e-24 }
  0xc9   :  { %308 = vrsqrt.f32 %v85_v10 }
  0xca   :  { %v57_v11 = vpop.xlane.xlu0 %56 }
  0xcb   :  { %v58_v12 = vsub.f32 %v52_v2, %v57_v11 }
  0xcd   :  { %v59_v13 = vmul.f32 1.442695, %v58_v12 }
  0xcf   :  { %310 = vpow2.f32 %v59_v13 }
  0xd3   :  { %v309_v14 = vpop.eup %308 }
  0xd4   :  { %v87_v15 = vmul.f32 %v309_v14, %v51_v0  ;;  %v187_v52 = vpop.xlane.xlu0 %186 }
  0xd5   :  { %v188_v53 = vrot.slane %v187_v52, 4 }
  0xd6   :  { %v89_v16 = vpack.c.bf16 %v87_v15, %v87_v15 }
  0xd7   :  { %v189_v54 = vadd.f32 %v188_v53, %v187_v52 }
  0xd8   :  { %v134_v17 = vsel %vm81_vm0, %v89_v16, 0  ;;  %v197_v37 = vunpack.c.l.bf16 %v89_v16 }
  0xd9   :  { %v311_v18 = vpop.eup %310  ;;  %283 = vmatpush3.bf16.xpose.msra.mxu1 %v134_v17  ;;  %v190_v55 = vrot.slane %v189_v54, 2 }
  0xda   :  { %v61_v19 = vsel %vm54_vm1, %v311_v18, 0.0  ;;  %v198_v40 = vmul.f32 %v197_v37, %v197_v37 }
  0xdb   :  { %62 = vadd.xlane.f32.xlu1 %v61_v19  ;;  %v191_v60 = vadd.f32 %v190_v55, %v189_v54 }
  0xdc   :  { %v199_v41 = vsel %vm81_vm0, %v198_v40, 0.0 }
  0xdd   :  { %v192_v1 = vrot.slane %v191_v60, 1 }
  0xdf   :  { %v193_v6 = vadd.f32 %v192_v1, %v191_v60 }
  0xe0   :  { %285 = vmatmul.mubr.msk.bf16.vlgmr.msra.gmra.mrb[0].mxu1 %vm81_vm0, %v89_v16 }
 0x114   :  { %v127_v29 = vpop.f32.mrb[0].mxu0 }
 0x115   :  { %v280_v30 = vpop.f32.mrb[1].mxu0  ;;  %v224_v42 = vsub.f32 1.0, %v127_v29 }
 0x116   :  { %v130_v31 = vpop.f32.mrb[2].mxu0 }
 0x117   :  { %v281_v32 = vpop.f32.mrb[3].mxu0 }
 0x168   :  { %v63_v33 = vpop.xlane.xlu1 %62 }
 0x169   :  { %312 = vlog2.f32 %v63_v33 }
 0x173   :  { %v313_v34 = vpop.eup %312 }
 0x174   :  { %v65_v35 = vmul.f32 0.6931472, %v313_v34 }
 0x176   :  { %v66_v36 = vsub.f32 %v58_v12, %v65_v35 }
 0x178   :  { %v67_v38 = vmul.f32 %v66_v36, %v53_v5 }
 0x17a   :  { %v68_v39 = vsel %vm54_vm1, %v67_v38, 0.0 }
 0x17b   :  { %69 = vadd.xlane.f32.xlu1 %v68_v39 }
 0x17f   :  { %200 = vadd.xlane.f32.xlu1 %v199_v41 }
 0x1b3   :  { %v170_v43 = vpop.f32.mrb[0].mxu1 }
 0x1b4   :  { %v209_v44 = vmul.f32 %v170_v43, %v127_v29  ;;  %v225_v45 = vand.u32 2147483647, %v170_v43  ;;  %v286_v46 = vpop.f32.mrb[1].mxu1 }
 0x1b5   :  { %v173_v47 = vpop.f32.mrb[2].mxu1 }
 0x1b6   :  { %v287_v48 = vpop.f32.mrb[3].mxu1  ;;  %v211_v49 = vsel %vm210_vm4, %v209_v44, 0.0  ;;  %v226_v50 = vmul.f32 %v225_v45, %v224_v42 }
 0x1b7   :  { %212 = vadd.xlane.f32.xlu0 %v211_v49 }
 0x1b8   :  { %v227_v51 = vsel %vm210_vm4, %v226_v50, 0.0 }
 0x1b9   :  { %228 = vadd.xlane.f32.xlu1 %v227_v51 }
 0x208   :  { %v70_v56 = vpop.xlane.xlu1 %69 }
 0x209   :  { %v71_v57 = vrot.slane %v70_v56, 4 }
 0x20b   :  { %v72_v58 = vadd.f32 %v71_v57, %v70_v56 }
 0x20c   :  { %v201_v59 = vpop.xlane.xlu1 %200 }
 0x20d   :  { %v73_v61 = vrot.slane %v72_v58, 2  ;;  %v202_v62 = vrot.slane %v201_v59, 4 }
 0x20f   :  { %v203_v63 = vadd.f32 %v202_v62, %v201_v59  ;;  %v74_v0 = vadd.f32 %v73_v61, %v72_v58 }
 0x211   :  { %v204_v2 = vrot.slane %v203_v63, 2  ;;  %v75_v3 = vrot.slane %v74_v0, 1 }
 0x213   :  { %v76_v4 = vadd.f32 %v75_v3, %v74_v0  ;;  %v205_v5 = vadd.f32 %v204_v2, %v203_v63 }
 0x215   :  { %288 = vpush %v76_v4  ;;  %v206_v7 = vrot.slane %v205_v5, 1 }
 0x216   :  { %290 = vpush %v193_v6 }
 0x217   :  { %v207_v8 = vadd.f32 %v206_v7, %v205_v5 }
 0x219   :  { %292 = vpush %v207_v8 }
 0x244   :  { %v213_v9 = vpop.xlane.xlu0 %212 }
 0x245   :  { %v214_v10 = vrot.slane %v213_v9, 4 }
 0x246   :  { %s472_s2 = spop %288  ;;  %v229_v11 = vpop.xlane.xlu1 %228 }
 0x247   :  { %v215_v12 = vadd.f32 %v214_v10, %v213_v9  ;;  %v230_v13 = vrot.slane %v229_v11, 4  ;;  %s291_s19 = spop %290  ;;  %s78_s4 = ssub.f32 0.0, %s472_s2 }
 0x248   :  { %s271_s20 = sadd.f32 -8.0, %s291_s19 }
 0x249   :  { %v216_v14 = vrot.slane %v215_v12, 2  ;;  %v231_v15 = vadd.f32 %v230_v13, %v229_v11  ;;  %s196_s21 = ssub.f32 64.0, %s291_s19  ;;  %s79_s8 = smul.f32 0.125, %s78_s4 }
 0x24a   :  { %s237_s22 = sadd.f32 1e-06, %s271_s20  ;;  %s293_s24 = spop %292 }
 0x24b   :  { %v217_v16 = vadd.f32 %v216_v14, %v215_v12  ;;  %v232_v17 = vrot.slane %v231_v15, 2  ;;  %s242_s23 = sadd.f32 1e-06, %s196_s21  ;;  %p222_p10 = scmp.gt.f32.partialorder %s271_s20, 0.5 }
 0x24c   :  { %v238_v18 = vstv %s237_s22 }
 0x24d   :  { %v233_v19 = vadd.f32 %v232_v17, %v231_v15  ;;  %314 = vrcp.f32 %v238_v18  ;;  %v243_v20 = vstv %s242_s23  ;;  %v218_v21 = vrot.slane %v217_v16, 1 }
 0x24e   :  { %316 = vrcp.f32 %v243_v20 }
 0x24f   :  { %v219_v22 = vadd.f32 %v218_v21, %v217_v16  ;;  %v234_v23 = vrot.slane %v233_v19, 1 }
 0x251   :  { %294 = vpush %v219_v22  ;;  %v235_v24 = vadd.f32 %v234_v23, %v233_v19 }
 0x253   :  { %296 = vpush %v235_v24 }
 0x257   :  { %v315_v25 = vpop.eup %314 }
 0x258   :  { %v317_v26 = vpop.eup %316  ;;  %298 = vpush %v315_v25 }
 0x259   :  { %300 = vpush %v317_v26 }
 0x282   :  { %s295_s25 = spop %294 }
 0x283   :  { %s221_s26 = ssub.f32 %s295_s25, %s293_s24 }
 0x284   :  { %s297_s27 = spop %296 }
 0x285   :  { %s492_s26 = smov (!%p222_p10, %s221_s26), 0.0 }
 0x289   :  { %s299_s28 = spop %298 }
 0x28a   :  { %s241_s29 = smul.f32 %s299_s28, %s492_s26  ;;  %s301_s30 = spop %300 }
 0x28b   :  { %s246_s5 = smul.f32 %s301_s30, %s297_s27 }
 0x28c   :  { %s247_s6 = ssub.f32 1.0, %s241_s29 }
 0x28d   :  { %s248_s1 = smul.f32 2.0, %s246_s5 }
 0x28f   :  { %s249_s7 = sadd.f32 %s248_s1, %s247_s6 }
 0x291   :  { %s250_s9 = smul.f32 0.1, %s249_s7 }
 0x293   :  { %s251_s10 = sadd.f32 %s250_s9, %s79_s8 }
 0x295   :  { %253 = sst [smem:[#allocation8]] %s251_s10 }
 0x296   :  { %393 = shalt.err (!%p390_p13)
}
 0x297   :  { %s405_s0 = smov [#allocation8]  }
 0x298   :  { %261 = dma.smem_to_hbm %s405_s0, 16, %s490_s3, [#allocation4]  }
 0x299   :  { %398 = dma.done.wait [#allocation4], 16  }
 0x29a   :  { %399 = vsyncadd [#allocation4], 4294967280 }
 0x29b   :  { %265 = sfence }
 0x29c   :  { %266 = vsyncpa [#allocation3], 1 }
 0x29d   :  { %267 = vsyncpa [#allocation6], 1 }
 0x29e   :  { %268 = vsyncpa [#allocation4], 1 }

</bundles_post_ra>
